<compile_context>
chip_gen: v5e
topology: v5e:2x2
jax: 0.10.0
libtpu: 0.0.40
codegen_flags: <defaults>
</compile_context>

<pallas_src>
import math

import jax
import jax.numpy as jnp
from jax.experimental import pallas as pl
from jax.experimental.pallas import tpu as pltpu


def _make_kernel(block_b, S, E, H, mm_dtype):
    Dh = E // H
    scale = 1.0 / math.sqrt(Dh)
    eps = 1e-5
    M = block_b * S

    def kernel(x_ref, mask_ref,
               ln1_w_ref, ln1_b_ref,
               in_w_ref, in_b_ref,
               out_w_ref, out_b_ref,
               ln2_w_ref, ln2_b_ref,
               w1_ref, b1_ref,
               w2_ref, b2_ref,
               o_ref,
               attn_ref):
        x = x_ref[...].reshape(M, E)          # (block_b*S, E), f32
        mask = mask_ref[...]                  # (S, S), f32 additive mask

        def layernorm(v, w, b):
            mu = jnp.mean(v, axis=-1, keepdims=True)
            var = jnp.mean((v - mu) ** 2, axis=-1, keepdims=True)
            return (v - mu) * jax.lax.rsqrt(var + eps) * w + b

        def linear(v, w_ref, b_ref):
            # Weights are pre-transposed to (in, out) in the wrapper -> plain
            # A @ W with K on sublane / N on lane (no in-kernel transpose).
            w = w_ref[...]
            y = jnp.dot(v.astype(w.dtype), w,
                        preferred_element_type=jnp.float32)
            return y + b_ref[...]

        # ---------------- self-attention block ----------------
        residue = x
        h = layernorm(x, ln1_w_ref[...], ln1_b_ref[...])
        qkv = linear(h, in_w_ref, in_b_ref).reshape(block_b, S, 3 * E)

        # Hoist the mask broadcast out of the head loop (JAX does not CSE it).
        mask_b = jnp.broadcast_to(mask, (block_b, S, S))

        for hh in range(H):                   # static unroll over heads
            q = qkv[:, :, 0 * E + hh * Dh: 0 * E + (hh + 1) * Dh].astype(mm_dtype)
            k = qkv[:, :, 1 * E + hh * Dh: 1 * E + (hh + 1) * Dh].astype(mm_dtype)
            v = qkv[:, :, 2 * E + hh * Dh: 2 * E + (hh + 1) * Dh].astype(mm_dtype)
            # Scores batched over this block's sequences: (block_b, S, S), f32.
            s = jnp.einsum("bqd,bkd->bqk", q, k,
                           preferred_element_type=jnp.float32)
            s = s * scale + mask_b
            s = s - jnp.max(s, axis=-1, keepdims=True)
            p = jnp.exp(s)
            p = p * pl.reciprocal(jnp.sum(p, axis=-1, keepdims=True), approx=True)
            o_h = jnp.einsum("bqk,bkd->bqd", p.astype(mm_dtype), v,
                             preferred_element_type=jnp.float32)
            # Write each head at its static lane offset into VMEM scratch
            # (no H-way concatenate / extra (M, E) copy, shorter live ranges).
            attn_ref[:, :, hh * Dh:(hh + 1) * Dh] = o_h

        attn = linear(attn_ref[...].reshape(M, E), out_w_ref, out_b_ref)
        x1 = attn + residue

        # ---------------- MLP block (quick GELU) ----------------
        h2 = layernorm(x1, ln2_w_ref[...], ln2_b_ref[...])
        h2 = linear(h2, w1_ref, b1_ref)
        h2 = h2 * jax.nn.sigmoid(1.702 * h2)
        h2 = linear(h2, w2_ref, b2_ref)
        o_ref[...] = (h2 + x1).reshape(block_b, S, E)

    return kernel


def _largest_divisor_at_most(n, cap):
    for c in range(min(n, max(cap, 1)), 0, -1):
        if n % c == 0:
            return c
    return 1


def _pick_block_b(B, S, m_target=512):
    """Target ~m_target rows per step, but keep grid_b >= 2 when B >= 2 so the
    'parallel' grid axis can be split across TensorCores (v7x megacore)."""
    cap = max(1, m_target // max(S, 1))
    if B >= 2:
        cap = min(cap, B // 2)
    return _largest_divisor_at_most(B, max(cap, 1))


def _invariant_spec(shape):
    """Grid-invariant block: fetched once, single-buffered.

    Constructed unconditionally: if this JAX has no pipeline_mode/Buffered
    support we fail loudly instead of silently double-buffering ~28 MB of
    weights (which would blow the VMEM budget this kernel is sized for)."""
    index_map = lambda b: (0,) * len(shape)
    return pl.BlockSpec(shape, index_map, pipeline_mode=pl.Buffered(1))


def _default_vmem_limit(resident_bytes, block_bytes):
    try:
        phys = int(pltpu.get_tpu_info().vmem_capacity_bytes)
    except Exception:
        phys = 128 * 1024 * 1024
    # Resident weights/mask (single-buffered) + double-buffered in/out
    # activation blocks + generous allowance for in-kernel intermediates
    # (qkv, 4E MLP tensor, per-head temporaries) and compiler scratch.
    needed = resident_bytes + 4 * block_bytes + 12 * block_bytes
    limit = max(int(needed * 1.5), 48 * 1024 * 1024)
    return min(limit, int(phys * 0.9))


def clip_layer_pallas(x, mask, params, n_head, *,
                      block_b=None,
                      param_dtype=jnp.bfloat16,
                      vmem_limit_bytes=None):
    """x: (B, S, E) f32, mask: (S, S) f32 additive attention mask."""
    B, S, E = x.shape
    f32 = jnp.float32

    # ---- pad S to a sublane multiple so in-kernel reshapes are tile-aligned.
    S_pad = max(8, ((S + 7) // 8) * 8)
    if S_pad != S:
        pad = S_pad - S
        x = jnp.pad(x.astype(f32), ((0, 0), (0, pad), (0, 0)))
        # Pad key columns must never win the softmax: large negative additive
        # mask.  Pad query rows are sliced off after the call.
        mask = jnp.pad(mask.astype(f32), ((0, pad), (0, pad)),
                       constant_values=-1e9)
    else:
        x = x.astype(f32)
        mask = mask.astype(f32)

    if block_b is None:
        block_b = _pick_block_b(B, S_pad)
    assert B % block_b == 0, (B, block_b)
    grid_b = B // block_b

    kernel = _make_kernel(block_b, S_pad, E, n_head, param_dtype)

    # Weight matrices: pre-transpose once to (in, out) and cast to the matmul
    # dtype (bf16 by default); LayerNorm params and biases stay f32.
    def w_t(p):
        return jnp.transpose(jnp.asarray(p, f32)).astype(param_dtype)

    param_list = [
        params["ln1_w"].astype(f32), params["ln1_b"].astype(f32),
        w_t(params["in_proj_w"]), params["in_proj_b"].astype(f32),
        w_t(params["out_proj_w"]), params["out_proj_b"].astype(f32),
        params["ln2_w"].astype(f32), params["ln2_b"].astype(f32),
        w_t(params["w1"]), params["b1"].astype(f32),
        w_t(params["w2"]), params["b2"].astype(f32),
    ]

    in_specs = [
        pl.BlockSpec((block_b, S_pad, E), lambda b: (b, 0, 0)),  # activations
        _invariant_spec((S_pad, S_pad)),                          # shared mask
    ] + [_invariant_spec(p.shape) for p in param_list]
    out_spec = pl.BlockSpec((block_b, S_pad, E), lambda b: (b, 0, 0))

    block_bytes = block_b * S_pad * E * 4
    resident_bytes = int(sum(int(p.size) * p.dtype.itemsize for p in param_list)
                         + mask.size * mask.dtype.itemsize)
    if vmem_limit_bytes is None:
        vmem_limit_bytes = _default_vmem_limit(resident_bytes, block_bytes)

    # Advisory cost estimate so XLA schedules surrounding ops around the call.
    flops = int(2 * B * S_pad * E * E * (3 + 1 + 4 + 4)     # projections + MLP
                + 4 * B * S_pad * S_pad * E)                 # QK^T and P@V
    transcendentals = int(B * n_head * S_pad * S_pad + 4 * B * S_pad * E
                          + 2 * B * S_pad)
    bytes_accessed = int(resident_bytes + 2 * B * S_pad * E * 4)

    fn = pl.pallas_call(
        kernel,
        out_shape=jax.ShapeDtypeStruct((B, S_pad, E), jnp.float32),
        grid_spec=pltpu.PrefetchScalarGridSpec(
            num_scalar_prefetch=0,
            grid=(grid_b,),
            in_specs=in_specs,
            out_specs=out_spec,
            scratch_shapes=[pltpu.VMEM((block_b, S_pad, E), jnp.float32)],
        ),
        compiler_params=pltpu.CompilerParams(
            dimension_semantics=("parallel",),
            vmem_limit_bytes=int(vmem_limit_bytes)),
        cost_estimate=pl.CostEstimate(
            flops=flops, transcendentals=transcendentals,
            bytes_accessed=bytes_accessed),
    )
    out = fn(x, mask, *param_list)
    if S_pad != S:
        out = out[:, :S, :]
    return out


def make_params(key, n_embd, n_head):
    """Deterministic synthetic parameters with the same shapes as the module."""
    E = n_embd
    ks = jax.random.split(key, 8)
    sd = 0.05
    params = {
        # nn.LayerNorm(n_embd): weight=1, bias=0 at init
        "ln1_w": jnp.ones((1, E), jnp.float32),
        "ln1_b": jnp.zeros((1, E), jnp.float32),
        "ln2_w": jnp.ones((1, E), jnp.float32),
        "ln2_b": jnp.zeros((1, E), jnp.float32),
        # nn.MultiheadAttention in_proj: (3E, E) weight, (3E,) bias
        "in_proj_w": sd * jax.random.normal(ks[0], (3 * E, E), jnp.float32),
        "in_proj_b": sd * jax.random.normal(ks[1], (1, 3 * E), jnp.float32),
        # out_proj: (E, E) weight, (E,) bias
        "out_proj_w": sd * jax.random.normal(ks[2], (E, E), jnp.float32),
        "out_proj_b": sd * jax.random.normal(ks[3], (1, E), jnp.float32),
        # linear_1: (4E, E), (4E,)
        "w1": sd * jax.random.normal(ks[4], (4 * E, E), jnp.float32),
        "b1": sd * jax.random.normal(ks[5], (1, 4 * E), jnp.float32),
        # linear_2: (E, 4E), (E,)
        "w2": sd * jax.random.normal(ks[6], (E, 4 * E), jnp.float32),
        "b2": sd * jax.random.normal(ks[7], (1, E), jnp.float32),
    }
    return params


def clip_layer_reference(x, mask, params, n_head):
    """Pure-JAX reference reproducing the PyTorch forward."""
    B, S, E = x.shape
    H = n_head
    Dh = E // H

    def ln(v, w, b):
        mu = jnp.mean(v, axis=-1, keepdims=True)
        var = jnp.mean((v - mu) ** 2, axis=-1, keepdims=True)
        return (v - mu) / jnp.sqrt(var + 1e-5) * w + b

    residue = x
    h = ln(x, params["ln1_w"], params["ln1_b"])
    qkv = jnp.einsum("bse,fe->bsf", h, params["in_proj_w"]) + params["in_proj_b"]
    q, k, v = jnp.split(qkv, 3, axis=-1)
    q = q.reshape(B, S, H, Dh).transpose(0, 2, 1, 3)
    k = k.reshape(B, S, H, Dh).transpose(0, 2, 1, 3)
    v = v.reshape(B, S, H, Dh).transpose(0, 2, 1, 3)
    s = jnp.einsum("bhqd,bhkd->bhqk", q, k) / math.sqrt(Dh) + mask
    p = jax.nn.softmax(s, axis=-1)
    o = jnp.einsum("bhqk,bhkd->bhqd", p, v).transpose(0, 2, 1, 3).reshape(B, S, E)
    o = jnp.einsum("bse,fe->bsf", o, params["out_proj_w"]) + params["out_proj_b"]
    x1 = o + residue

    residue2 = x1
    h2 = ln(x1, params["ln2_w"], params["ln2_b"])
    h2 = jnp.einsum("bse,fe->bsf", h2, params["w1"]) + params["b1"]
    h2 = h2 * jax.nn.sigmoid(1.702 * h2)
    h2 = jnp.einsum("bsf,ef->bse", h2, params["w2"]) + params["b2"]
    return h2 + residue2


def _causal_mask(S):
    neg = jnp.full((S, S), -1e9, jnp.float32)
    return jnp.where(jnp.tril(jnp.ones((S, S), bool)), 0.0, neg)


if __name__ == "__main__":
    B, S, E, H = 2, 8, 32, 4

    key = jax.random.PRNGKey(0)
    kx, kp, kx2 = jax.random.split(key, 3)
    x = jax.random.normal(kx, (B, S, E), jnp.float32)
    causal_mask = _causal_mask(S)
    params = make_params(kp, E, H)
    ref = clip_layer_reference(x, causal_mask, params, H)

    # Default path: bf16 MXU inputs, f32 accumulation / elementwise math.
    out = jax.block_until_ready(clip_layer_pallas(x, causal_mask, params, H))
    assert out.shape == (B, S, E)
    err = float(jnp.max(jnp.abs(out - ref)))
    assert jnp.allclose(out, ref, atol=5e-2, rtol=5e-2), err

    # f32 matmul path: tighter tolerance (only approx softmax reciprocal left).
    out_f32 = jax.block_until_ready(
        clip_layer_pallas(x, causal_mask, params, H, param_dtype=jnp.float32))
    err_f32 = float(jnp.max(jnp.abs(out_f32 - ref)))
    assert jnp.allclose(out_f32, ref, atol=5e-3, rtol=5e-3), err_f32

    # Non-multiple-of-8 sequence length exercises the S-padding path
    # (pad key columns masked with -1e9, pad query rows sliced off).
    S2 = 13
    x2 = jax.random.normal(kx2, (B, S2, E), jnp.float32)
    mask2 = _causal_mask(S2)
    ref2 = clip_layer_reference(x2, mask2, params, H)
    out2 = jax.block_until_ready(clip_layer_pallas(x2, mask2, params, H))
    assert out2.shape == (B, S2, E)
    err2 = float(jnp.max(jnp.abs(out2 - ref2)))
    assert jnp.allclose(out2, ref2, atol=5e-2, rtol=5e-2), err2

    print("KERNEL_OK")
</pallas_src>

<mosaic_0001>
module attributes {stable_mosaic.version = 11 : i64} {
  func.func @kernel(%arg0: i32, %arg1: memref<1x8x32xf32, #tpu.memory_space<vmem>>, %arg2: memref<8x8xf32, #tpu.memory_space<vmem>>, %arg3: memref<1x32xf32, #tpu.memory_space<vmem>>, %arg4: memref<1x32xf32, #tpu.memory_space<vmem>>, %arg5: memref<32x96xbf16, #tpu.memory_space<vmem>>, %arg6: memref<1x96xf32, #tpu.memory_space<vmem>>, %arg7: memref<32x32xbf16, #tpu.memory_space<vmem>>, %arg8: memref<1x32xf32, #tpu.memory_space<vmem>>, %arg9: memref<1x32xf32, #tpu.memory_space<vmem>>, %arg10: memref<1x32xf32, #tpu.memory_space<vmem>>, %arg11: memref<32x128xbf16, #tpu.memory_space<vmem>>, %arg12: memref<1x128xf32, #tpu.memory_space<vmem>>, %arg13: memref<128x32xbf16, #tpu.memory_space<vmem>>, %arg14: memref<1x32xf32, #tpu.memory_space<vmem>>, %arg15: memref<1x8x32xf32, #tpu.memory_space<vmem>>, %arg16: memref<1x8x32xf32, #tpu.memory_space<vmem>>) attributes {dimension_semantics = [#tpu.dimension_semantics<parallel>], iteration_bounds = array<i64: 2>, scalar_prefetch = 0 : i64, scratch_operands = 1 : i64, tpu.core_type = #tpu.core_type<tc>, window_params = [{transform_indices = @transform_0, window_bounds = array<i64: 1, 8, 32>}, {pipeline_mode = #tpu.pipeline_mode<synchronous>, transform_indices = @transform_1, window_bounds = array<i64: 8, 8>}, {pipeline_mode = #tpu.pipeline_mode<synchronous>, transform_indices = @transform_2, window_bounds = array<i64: 1, 32>}, {pipeline_mode = #tpu.pipeline_mode<synchronous>, transform_indices = @transform_3, window_bounds = array<i64: 1, 32>}, {pipeline_mode = #tpu.pipeline_mode<synchronous>, transform_indices = @transform_4, window_bounds = array<i64: 32, 96>}, {pipeline_mode = #tpu.pipeline_mode<synchronous>, transform_indices = @transform_5, window_bounds = array<i64: 1, 96>}, {pipeline_mode = #tpu.pipeline_mode<synchronous>, transform_indices = @transform_6, window_bounds = array<i64: 32, 32>}, {pipeline_mode = #tpu.pipeline_mode<synchronous>, transform_indices = @transform_7, window_bounds = array<i64: 1, 32>}, {pipeline_mode = #tpu.pipeline_mode<synchronous>, transform_indices = @transform_8, window_bounds = array<i64: 1, 32>}, {pipeline_mode = #tpu.pipeline_mode<synchronous>, transform_indices = @transform_9, window_bounds = array<i64: 1, 32>}, {pipeline_mode = #tpu.pipeline_mode<synchronous>, transform_indices = @transform_10, window_bounds = array<i64: 32, 128>}, {pipeline_mode = #tpu.pipeline_mode<synchronous>, transform_indices = @transform_11, window_bounds = array<i64: 1, 128>}, {pipeline_mode = #tpu.pipeline_mode<synchronous>, transform_indices = @transform_12, window_bounds = array<i64: 128, 32>}, {pipeline_mode = #tpu.pipeline_mode<synchronous>, transform_indices = @transform_13, window_bounds = array<i64: 1, 32>}, {transform_indices = @transform_14, window_bounds = array<i64: 1, 8, 32>}]} {
    %c0 = arith.constant 0 : index
    %c0_0 = arith.constant 0 : index
    %c0_1 = arith.constant 0 : index
    %0 = vector.load %arg1[%c0, %c0_0, %c0_1] : memref<1x8x32xf32, #tpu.memory_space<vmem>>, vector<1x8x32xf32>
    %1 = vector.shape_cast %0 : vector<1x8x32xf32> to vector<8x32xf32>
    %c0_2 = arith.constant 0 : index
    %c0_3 = arith.constant 0 : index
    %2 = vector.load %arg2[%c0_2, %c0_3] : memref<8x8xf32, #tpu.memory_space<vmem>>, vector<8x8xf32>
    %c0_4 = arith.constant 0 : index
    %c0_5 = arith.constant 0 : index
    %3 = vector.load %arg3[%c0_4, %c0_5] : memref<1x32xf32, #tpu.memory_space<vmem>>, vector<1x32xf32>
    %c0_6 = arith.constant 0 : index
    %c0_7 = arith.constant 0 : index
    %4 = vector.load %arg4[%c0_6, %c0_7] : memref<1x32xf32, #tpu.memory_space<vmem>>, vector<1x32xf32>
    %cst = arith.constant dense<0.000000e+00> : vector<8xf32>
    %5 = vector.multi_reduction <add>, %1, %cst [1] : vector<8x32xf32> to vector<8xf32>
    %6 = vector.shape_cast %5 : vector<8xf32> to vector<8x1xf32>
    %cst_8 = arith.constant 3.200000e+01 : f32
    %7 = vector.broadcast %cst_8 : f32 to vector<8x1xf32>
    %8 = arith.divf %6, %7 : vector<8x1xf32>
    %9 = vector.broadcast %8 : vector<8x1xf32> to vector<8x32xf32>
    %10 = arith.subf %1, %9 : vector<8x32xf32>
    %11 = arith.mulf %10, %10 : vector<8x32xf32>
    %cst_9 = arith.constant dense<0.000000e+00> : vector<8xf32>
    %12 = vector.multi_reduction <add>, %11, %cst_9 [1] : vector<8x32xf32> to vector<8xf32>
    %13 = vector.shape_cast %12 : vector<8xf32> to vector<8x1xf32>
    %cst_10 = arith.constant 3.200000e+01 : f32
    %14 = vector.broadcast %cst_10 : f32 to vector<8x1xf32>
    %15 = arith.divf %13, %14 : vector<8x1xf32>
    %16 = vector.broadcast %8 : vector<8x1xf32> to vector<8x32xf32>
    %17 = arith.subf %1, %16 : vector<8x32xf32>
    %cst_11 = arith.constant 9.99999974E-6 : f32
    %18 = vector.broadcast %cst_11 : f32 to vector<8x1xf32>
    %19 = arith.addf %15, %18 : vector<8x1xf32>
    %20 = math.rsqrt %19 : vector<8x1xf32>
    %21 = vector.broadcast %20 : vector<8x1xf32> to vector<8x32xf32>
    %22 = arith.mulf %17, %21 : vector<8x32xf32>
    %23 = vector.broadcast %3 : vector<1x32xf32> to vector<8x32xf32>
    %24 = arith.mulf %22, %23 : vector<8x32xf32>
    %25 = vector.broadcast %4 : vector<1x32xf32> to vector<8x32xf32>
    %26 = arith.addf %24, %25 : vector<8x32xf32>
    %c0_12 = arith.constant 0 : index
    %c0_13 = arith.constant 0 : index
    %27 = vector.load %arg5[%c0_12, %c0_13] : memref<32x96xbf16, #tpu.memory_space<vmem>>, vector<32x96xbf16>
    %28 = arith.truncf %26 : vector<8x32xf32> to vector<8x32xbf16>
    %cst_14 = arith.constant dense<0.000000e+00> : vector<8x96xf32>
    %29 = tpu.matmul %28, %27, %cst_14 {dimension_numbers = #tpu.dot_dimension_numbers<[1], [0], [0], [1], [0, 0, 1, 1], [], []>} : vector<8x32xbf16>, vector<32x96xbf16>, vector<8x96xf32> -> vector<8x96xf32>
    %c0_15 = arith.constant 0 : index
    %c0_16 = arith.constant 0 : index
    %30 = vector.load %arg6[%c0_15, %c0_16] : memref<1x96xf32, #tpu.memory_space<vmem>>, vector<1x96xf32>
    %31 = vector.broadcast %30 : vector<1x96xf32> to vector<8x96xf32>
    %32 = arith.addf %29, %31 : vector<8x96xf32>
    %33 = vector.shape_cast %32 : vector<8x96xf32> to vector<1x8x96xf32>
    %34 = vector.shape_cast %2 : vector<8x8xf32> to vector<1x8x8xf32>
    %35 = vector.extract_strided_slice %33 {offsets = [0, 0, 0], sizes = [1, 8, 8], strides = [1, 1, 1]} : vector<1x8x96xf32> to vector<1x8x8xf32>
    %36 = arith.truncf %35 : vector<1x8x8xf32> to vector<1x8x8xbf16>
    %37 = vector.extract_strided_slice %33 {offsets = [0, 0, 32], sizes = [1, 8, 8], strides = [1, 1, 1]} : vector<1x8x96xf32> to vector<1x8x8xf32>
    %38 = arith.truncf %37 : vector<1x8x8xf32> to vector<1x8x8xbf16>
    %39 = vector.extract_strided_slice %33 {offsets = [0, 0, 64], sizes = [1, 8, 8], strides = [1, 1, 1]} : vector<1x8x96xf32> to vector<1x8x8xf32>
    %40 = arith.truncf %39 : vector<1x8x8xf32> to vector<1x8x8xbf16>
    "tpu.trace_start"() <{level = 10 : i32, message = "bqd,bkd->bqk"}> : () -> ()
    %cst_17 = arith.constant dense<0.000000e+00> : vector<1x8x8xf32>
    %41 = tpu.matmul %36, %38, %cst_17 {dimension_numbers = #tpu.dot_dimension_numbers<[2], [2], [1], [1], [0, 0, 0, 1, 1, 1], [0], [0]>} : vector<1x8x8xbf16>, vector<1x8x8xbf16>, vector<1x8x8xf32> -> vector<1x8x8xf32>
    "tpu.trace_stop"() : () -> ()
    %cst_18 = arith.constant 0.353553385 : f32
    %42 = vector.broadcast %cst_18 : f32 to vector<1x8x8xf32>
    %43 = arith.mulf %41, %42 : vector<1x8x8xf32>
    %44 = arith.addf %43, %34 : vector<1x8x8xf32>
    %cst_19 = arith.constant dense<0xFF800000> : vector<1x8xf32>
    %45 = vector.multi_reduction <maximumf>, %44, %cst_19 [2] : vector<1x8x8xf32> to vector<1x8xf32>
    %46 = vector.shape_cast %45 : vector<1x8xf32> to vector<1x8x1xf32>
    %47 = vector.broadcast %46 : vector<1x8x1xf32> to vector<1x8x8xf32>
    %48 = arith.subf %44, %47 : vector<1x8x8xf32>
    %49 = math.exp %48 : vector<1x8x8xf32>
    %cst_20 = arith.constant dense<0.000000e+00> : vector<1x8xf32>
    %50 = vector.multi_reduction <add>, %49, %cst_20 [2] : vector<1x8x8xf32> to vector<1x8xf32>
    %51 = vector.shape_cast %50 : vector<1x8xf32> to vector<1x8x1xf32>
    %52 = tpu.reciprocal %51 {approx = true} : vector<1x8x1xf32> -> vector<1x8x1xf32>
    %53 = vector.broadcast %52 : vector<1x8x1xf32> to vector<1x8x8xf32>
    %54 = arith.mulf %49, %53 : vector<1x8x8xf32>
    %55 = arith.truncf %54 : vector<1x8x8xf32> to vector<1x8x8xbf16>
    "tpu.trace_start"() <{level = 10 : i32, message = "bqk,bkd->bqd"}> : () -> ()
    %cst_21 = arith.constant dense<0.000000e+00> : vector<1x8x8xf32>
    %56 = tpu.matmul %55, %40, %cst_21 {dimension_numbers = #tpu.dot_dimension_numbers<[2], [1], [1], [2], [0, 0, 0, 1, 1, 2], [0], [0]>} : vector<1x8x8xbf16>, vector<1x8x8xbf16>, vector<1x8x8xf32> -> vector<1x8x8xf32>
    "tpu.trace_stop"() : () -> ()
    %c0_22 = arith.constant 0 : index
    %c0_23 = arith.constant 0 : index
    %c0_24 = arith.constant 0 : index
    %57 = vector.load %arg16[%c0_22, %c0_23, %c0_24] : memref<1x8x32xf32, #tpu.memory_space<vmem>>, vector<1x8x8xf32>
    tpu.vector_store %arg16[%c0_22, %c0_23, %c0_24], %56 {strides = array<i32>} : memref<1x8x32xf32, #tpu.memory_space<vmem>>, vector<1x8x8xf32>,
    %58 = vector.extract_strided_slice %33 {offsets = [0, 0, 8], sizes = [1, 8, 8], strides = [1, 1, 1]} : vector<1x8x96xf32> to vector<1x8x8xf32>
    %59 = arith.truncf %58 : vector<1x8x8xf32> to vector<1x8x8xbf16>
    %60 = vector.extract_strided_slice %33 {offsets = [0, 0, 40], sizes = [1, 8, 8], strides = [1, 1, 1]} : vector<1x8x96xf32> to vector<1x8x8xf32>
    %61 = arith.truncf %60 : vector<1x8x8xf32> to vector<1x8x8xbf16>
    %62 = vector.extract_strided_slice %33 {offsets = [0, 0, 72], sizes = [1, 8, 8], strides = [1, 1, 1]} : vector<1x8x96xf32> to vector<1x8x8xf32>
    %63 = arith.truncf %62 : vector<1x8x8xf32> to vector<1x8x8xbf16>
    "tpu.trace_start"() <{level = 10 : i32, message = "bqd,bkd->bqk"}> : () -> ()
    %cst_25 = arith.constant dense<0.000000e+00> : vector<1x8x8xf32>
    %64 = tpu.matmul %59, %61, %cst_25 {dimension_numbers = #tpu.dot_dimension_numbers<[2], [2], [1], [1], [0, 0, 0, 1, 1, 1], [0], [0]>} : vector<1x8x8xbf16>, vector<1x8x8xbf16>, vector<1x8x8xf32> -> vector<1x8x8xf32>
    "tpu.trace_stop"() : () -> ()
    %cst_26 = arith.constant 0.353553385 : f32
    %65 = vector.broadcast %cst_26 : f32 to vector<1x8x8xf32>
    %66 = arith.mulf %64, %65 : vector<1x8x8xf32>
    %67 = arith.addf %66, %34 : vector<1x8x8xf32>
    %cst_27 = arith.constant dense<0xFF800000> : vector<1x8xf32>
    %68 = vector.multi_reduction <maximumf>, %67, %cst_27 [2] : vector<1x8x8xf32> to vector<1x8xf32>
    %69 = vector.shape_cast %68 : vector<1x8xf32> to vector<1x8x1xf32>
    %70 = vector.broadcast %69 : vector<1x8x1xf32> to vector<1x8x8xf32>
    %71 = arith.subf %67, %70 : vector<1x8x8xf32>
    %72 = math.exp %71 : vector<1x8x8xf32>
    %cst_28 = arith.constant dense<0.000000e+00> : vector<1x8xf32>
    %73 = vector.multi_reduction <add>, %72, %cst_28 [2] : vector<1x8x8xf32> to vector<1x8xf32>
    %74 = vector.shape_cast %73 : vector<1x8xf32> to vector<1x8x1xf32>
    %75 = tpu.reciprocal %74 {approx = true} : vector<1x8x1xf32> -> vector<1x8x1xf32>
    %76 = vector.broadcast %75 : vector<1x8x1xf32> to vector<1x8x8xf32>
    %77 = arith.mulf %72, %76 : vector<1x8x8xf32>
    %78 = arith.truncf %77 : vector<1x8x8xf32> to vector<1x8x8xbf16>
    "tpu.trace_start"() <{level = 10 : i32, message = "bqk,bkd->bqd"}> : () -> ()
    %cst_29 = arith.constant dense<0.000000e+00> : vector<1x8x8xf32>
    %79 = tpu.matmul %78, %63, %cst_29 {dimension_numbers = #tpu.dot_dimension_numbers<[2], [1], [1], [2], [0, 0, 0, 1, 1, 2], [0], [0]>} : vector<1x8x8xbf16>, vector<1x8x8xbf16>, vector<1x8x8xf32> -> vector<1x8x8xf32>
    "tpu.trace_stop"() : () -> ()
    %c0_30 = arith.constant 0 : index
    %c0_31 = arith.constant 0 : index
    %c8 = arith.constant 8 : index
    %80 = vector.load %arg16[%c0_30, %c0_31, %c8] : memref<1x8x32xf32, #tpu.memory_space<vmem>>, vector<1x8x8xf32>
    tpu.vector_store %arg16[%c0_30, %c0_31, %c8], %79 {strides = array<i32>} : memref<1x8x32xf32, #tpu.memory_space<vmem>>, vector<1x8x8xf32>,
    %81 = vector.extract_strided_slice %33 {offsets = [0, 0, 16], sizes = [1, 8, 8], strides = [1, 1, 1]} : vector<1x8x96xf32> to vector<1x8x8xf32>
    %82 = arith.truncf %81 : vector<1x8x8xf32> to vector<1x8x8xbf16>
    %83 = vector.extract_strided_slice %33 {offsets = [0, 0, 48], sizes = [1, 8, 8], strides = [1, 1, 1]} : vector<1x8x96xf32> to vector<1x8x8xf32>
    %84 = arith.truncf %83 : vector<1x8x8xf32> to vector<1x8x8xbf16>
    %85 = vector.extract_strided_slice %33 {offsets = [0, 0, 80], sizes = [1, 8, 8], strides = [1, 1, 1]} : vector<1x8x96xf32> to vector<1x8x8xf32>
    %86 = arith.truncf %85 : vector<1x8x8xf32> to vector<1x8x8xbf16>
    "tpu.trace_start"() <{level = 10 : i32, message = "bqd,bkd->bqk"}> : () -> ()
    %cst_32 = arith.constant dense<0.000000e+00> : vector<1x8x8xf32>
    %87 = tpu.matmul %82, %84, %cst_32 {dimension_numbers = #tpu.dot_dimension_numbers<[2], [2], [1], [1], [0, 0, 0, 1, 1, 1], [0], [0]>} : vector<1x8x8xbf16>, vector<1x8x8xbf16>, vector<1x8x8xf32> -> vector<1x8x8xf32>
    "tpu.trace_stop"() : () -> ()
    %cst_33 = arith.constant 0.353553385 : f32
    %88 = vector.broadcast %cst_33 : f32 to vector<1x8x8xf32>
    %89 = arith.mulf %87, %88 : vector<1x8x8xf32>
    %90 = arith.addf %89, %34 : vector<1x8x8xf32>
    %cst_34 = arith.constant dense<0xFF800000> : vector<1x8xf32>
    %91 = vector.multi_reduction <maximumf>, %90, %cst_34 [2] : vector<1x8x8xf32> to vector<1x8xf32>
    %92 = vector.shape_cast %91 : vector<1x8xf32> to vector<1x8x1xf32>
    %93 = vector.broadcast %92 : vector<1x8x1xf32> to vector<1x8x8xf32>
    %94 = arith.subf %90, %93 : vector<1x8x8xf32>
    %95 = math.exp %94 : vector<1x8x8xf32>
    %cst_35 = arith.constant dense<0.000000e+00> : vector<1x8xf32>
    %96 = vector.multi_reduction <add>, %95, %cst_35 [2] : vector<1x8x8xf32> to vector<1x8xf32>
    %97 = vector.shape_cast %96 : vector<1x8xf32> to vector<1x8x1xf32>
    %98 = tpu.reciprocal %97 {approx = true} : vector<1x8x1xf32> -> vector<1x8x1xf32>
    %99 = vector.broadcast %98 : vector<1x8x1xf32> to vector<1x8x8xf32>
    %100 = arith.mulf %95, %99 : vector<1x8x8xf32>
    %101 = arith.truncf %100 : vector<1x8x8xf32> to vector<1x8x8xbf16>
    "tpu.trace_start"() <{level = 10 : i32, message = "bqk,bkd->bqd"}> : () -> ()
    %cst_36 = arith.constant dense<0.000000e+00> : vector<1x8x8xf32>
    %102 = tpu.matmul %101, %86, %cst_36 {dimension_numbers = #tpu.dot_dimension_numbers<[2], [1], [1], [2], [0, 0, 0, 1, 1, 2], [0], [0]>} : vector<1x8x8xbf16>, vector<1x8x8xbf16>, vector<1x8x8xf32> -> vector<1x8x8xf32>
    "tpu.trace_stop"() : () -> ()
    %c0_37 = arith.constant 0 : index
    %c0_38 = arith.constant 0 : index
    %c16 = arith.constant 16 : index
    %103 = vector.load %arg16[%c0_37, %c0_38, %c16] : memref<1x8x32xf32, #tpu.memory_space<vmem>>, vector<1x8x8xf32>
    tpu.vector_store %arg16[%c0_37, %c0_38, %c16], %102 {strides = array<i32>} : memref<1x8x32xf32, #tpu.memory_space<vmem>>, vector<1x8x8xf32>,
    %104 = vector.extract_strided_slice %33 {offsets = [0, 0, 24], sizes = [1, 8, 8], strides = [1, 1, 1]} : vector<1x8x96xf32> to vector<1x8x8xf32>
    %105 = arith.truncf %104 : vector<1x8x8xf32> to vector<1x8x8xbf16>
    %106 = vector.extract_strided_slice %33 {offsets = [0, 0, 56], sizes = [1, 8, 8], strides = [1, 1, 1]} : vector<1x8x96xf32> to vector<1x8x8xf32>
    %107 = arith.truncf %106 : vector<1x8x8xf32> to vector<1x8x8xbf16>
    %108 = vector.extract_strided_slice %33 {offsets = [0, 0, 88], sizes = [1, 8, 8], strides = [1, 1, 1]} : vector<1x8x96xf32> to vector<1x8x8xf32>
    %109 = arith.truncf %108 : vector<1x8x8xf32> to vector<1x8x8xbf16>
    "tpu.trace_start"() <{level = 10 : i32, message = "bqd,bkd->bqk"}> : () -> ()
    %cst_39 = arith.constant dense<0.000000e+00> : vector<1x8x8xf32>
    %110 = tpu.matmul %105, %107, %cst_39 {dimension_numbers = #tpu.dot_dimension_numbers<[2], [2], [1], [1], [0, 0, 0, 1, 1, 1], [0], [0]>} : vector<1x8x8xbf16>, vector<1x8x8xbf16>, vector<1x8x8xf32> -> vector<1x8x8xf32>
    "tpu.trace_stop"() : () -> ()
    %cst_40 = arith.constant 0.353553385 : f32
    %111 = vector.broadcast %cst_40 : f32 to vector<1x8x8xf32>
    %112 = arith.mulf %110, %111 : vector<1x8x8xf32>
    %113 = arith.addf %112, %34 : vector<1x8x8xf32>
    %cst_41 = arith.constant dense<0xFF800000> : vector<1x8xf32>
    %114 = vector.multi_reduction <maximumf>, %113, %cst_41 [2] : vector<1x8x8xf32> to vector<1x8xf32>
    %115 = vector.shape_cast %114 : vector<1x8xf32> to vector<1x8x1xf32>
    %116 = vector.broadcast %115 : vector<1x8x1xf32> to vector<1x8x8xf32>
    %117 = arith.subf %113, %116 : vector<1x8x8xf32>
    %118 = math.exp %117 : vector<1x8x8xf32>
    %cst_42 = arith.constant dense<0.000000e+00> : vector<1x8xf32>
    %119 = vector.multi_reduction <add>, %118, %cst_42 [2] : vector<1x8x8xf32> to vector<1x8xf32>
    %120 = vector.shape_cast %119 : vector<1x8xf32> to vector<1x8x1xf32>
    %121 = tpu.reciprocal %120 {approx = true} : vector<1x8x1xf32> -> vector<1x8x1xf32>
    %122 = vector.broadcast %121 : vector<1x8x1xf32> to vector<1x8x8xf32>
    %123 = arith.mulf %118, %122 : vector<1x8x8xf32>
    %124 = arith.truncf %123 : vector<1x8x8xf32> to vector<1x8x8xbf16>
    "tpu.trace_start"() <{level = 10 : i32, message = "bqk,bkd->bqd"}> : () -> ()
    %cst_43 = arith.constant dense<0.000000e+00> : vector<1x8x8xf32>
    %125 = tpu.matmul %124, %109, %cst_43 {dimension_numbers = #tpu.dot_dimension_numbers<[2], [1], [1], [2], [0, 0, 0, 1, 1, 2], [0], [0]>} : vector<1x8x8xbf16>, vector<1x8x8xbf16>, vector<1x8x8xf32> -> vector<1x8x8xf32>
    "tpu.trace_stop"() : () -> ()
    %c0_44 = arith.constant 0 : index
    %c0_45 = arith.constant 0 : index
    %c24 = arith.constant 24 : index
    %126 = vector.load %arg16[%c0_44, %c0_45, %c24] : memref<1x8x32xf32, #tpu.memory_space<vmem>>, vector<1x8x8xf32>
    tpu.vector_store %arg16[%c0_44, %c0_45, %c24], %125 {strides = array<i32>} : memref<1x8x32xf32, #tpu.memory_space<vmem>>, vector<1x8x8xf32>,
    %c0_46 = arith.constant 0 : index
    %c0_47 = arith.constant 0 : index
    %c0_48 = arith.constant 0 : index
    %127 = vector.load %arg16[%c0_46, %c0_47, %c0_48] : memref<1x8x32xf32, #tpu.memory_space<vmem>>, vector<1x8x32xf32>
    %128 = vector.shape_cast %127 : vector<1x8x32xf32> to vector<8x32xf32>
    %c0_49 = arith.constant 0 : index
    %c0_50 = arith.constant 0 : index
    %129 = vector.load %arg7[%c0_49, %c0_50] : memref<32x32xbf16, #tpu.memory_space<vmem>>, vector<32x32xbf16>
    %130 = arith.truncf %128 : vector<8x32xf32> to vector<8x32xbf16>
    %cst_51 = arith.constant dense<0.000000e+00> : vector<8x32xf32>
    %131 = tpu.matmul %130, %129, %cst_51 {dimension_numbers = #tpu.dot_dimension_numbers<[1], [0], [0], [1], [0, 0, 1, 1], [], []>} : vector<8x32xbf16>, vector<32x32xbf16>, vector<8x32xf32> -> vector<8x32xf32>
    %c0_52 = arith.constant 0 : index
    %c0_53 = arith.constant 0 : index
    %132 = vector.load %arg8[%c0_52, %c0_53] : memref<1x32xf32, #tpu.memory_space<vmem>>, vector<1x32xf32>
    %133 = vector.broadcast %132 : vector<1x32xf32> to vector<8x32xf32>
    %134 = arith.addf %131, %133 : vector<8x32xf32>
    %135 = arith.addf %134, %1 : vector<8x32xf32>
    %c0_54 = arith.constant 0 : index
    %c0_55 = arith.constant 0 : index
    %136 = vector.load %arg9[%c0_54, %c0_55] : memref<1x32xf32, #tpu.memory_space<vmem>>, vector<1x32xf32>
    %c0_56 = arith.constant 0 : index
    %c0_57 = arith.constant 0 : index
    %137 = vector.load %arg10[%c0_56, %c0_57] : memref<1x32xf32, #tpu.memory_space<vmem>>, vector<1x32xf32>
    %cst_58 = arith.constant dense<0.000000e+00> : vector<8xf32>
    %138 = vector.multi_reduction <add>, %135, %cst_58 [1] : vector<8x32xf32> to vector<8xf32>
    %139 = vector.shape_cast %138 : vector<8xf32> to vector<8x1xf32>
    %cst_59 = arith.constant 3.200000e+01 : f32
    %140 = vector.broadcast %cst_59 : f32 to vector<8x1xf32>
    %141 = arith.divf %139, %140 : vector<8x1xf32>
    %142 = vector.broadcast %141 : vector<8x1xf32> to vector<8x32xf32>
    %143 = arith.subf %135, %142 : vector<8x32xf32>
    %144 = arith.mulf %143, %143 : vector<8x32xf32>
    %cst_60 = arith.constant dense<0.000000e+00> : vector<8xf32>
    %145 = vector.multi_reduction <add>, %144, %cst_60 [1] : vector<8x32xf32> to vector<8xf32>
    %146 = vector.shape_cast %145 : vector<8xf32> to vector<8x1xf32>
    %cst_61 = arith.constant 3.200000e+01 : f32
    %147 = vector.broadcast %cst_61 : f32 to vector<8x1xf32>
    %148 = arith.divf %146, %147 : vector<8x1xf32>
    %149 = vector.broadcast %141 : vector<8x1xf32> to vector<8x32xf32>
    %150 = arith.subf %135, %149 : vector<8x32xf32>
    %cst_62 = arith.constant 9.99999974E-6 : f32
    %151 = vector.broadcast %cst_62 : f32 to vector<8x1xf32>
    %152 = arith.addf %148, %151 : vector<8x1xf32>
    %153 = math.rsqrt %152 : vector<8x1xf32>
    %154 = vector.broadcast %153 : vector<8x1xf32> to vector<8x32xf32>
    %155 = arith.mulf %150, %154 : vector<8x32xf32>
    %156 = vector.broadcast %136 : vector<1x32xf32> to vector<8x32xf32>
    %157 = arith.mulf %155, %156 : vector<8x32xf32>
    %158 = vector.broadcast %137 : vector<1x32xf32> to vector<8x32xf32>
    %159 = arith.addf %157, %158 : vector<8x32xf32>
    %c0_63 = arith.constant 0 : index
    %c0_64 = arith.constant 0 : index
    %160 = vector.load %arg11[%c0_63, %c0_64] : memref<32x128xbf16, #tpu.memory_space<vmem>>, vector<32x128xbf16>
    %161 = arith.truncf %159 : vector<8x32xf32> to vector<8x32xbf16>
    %cst_65 = arith.constant dense<0.000000e+00> : vector<8x128xf32>
    %162 = tpu.matmul %161, %160, %cst_65 {dimension_numbers = #tpu.dot_dimension_numbers<[1], [0], [0], [1], [0, 0, 1, 1], [], []>} : vector<8x32xbf16>, vector<32x128xbf16>, vector<8x128xf32> -> vector<8x128xf32>
    %c0_66 = arith.constant 0 : index
    %c0_67 = arith.constant 0 : index
    %163 = vector.load %arg12[%c0_66, %c0_67] : memref<1x128xf32, #tpu.memory_space<vmem>>, vector<1x128xf32>
    %164 = vector.broadcast %163 : vector<1x128xf32> to vector<8x128xf32>
    %165 = arith.addf %162, %164 : vector<8x128xf32>
    %cst_68 = arith.constant 1.702000e+00 : f32
    %166 = vector.broadcast %cst_68 : f32 to vector<8x128xf32>
    %167 = arith.mulf %166, %165 : vector<8x128xf32>
    %168 = arith.negf %167 : vector<8x128xf32>
    %169 = math.exp %168 : vector<8x128xf32>
    %cst_69 = arith.constant 1.000000e+00 : f32
    %170 = vector.broadcast %cst_69 : f32 to vector<8x128xf32>
    %171 = arith.addf %170, %169 : vector<8x128xf32>
    %172 = arith.divf %170, %171 : vector<8x128xf32>
    %173 = arith.mulf %165, %172 : vector<8x128xf32>
    %c0_70 = arith.constant 0 : index
    %c0_71 = arith.constant 0 : index
    %174 = vector.load %arg13[%c0_70, %c0_71] : memref<128x32xbf16, #tpu.memory_space<vmem>>, vector<128x32xbf16>
    %175 = arith.truncf %173 : vector<8x128xf32> to vector<8x128xbf16>
    %cst_72 = arith.constant dense<0.000000e+00> : vector<8x32xf32>
    %176 = tpu.matmul %175, %174, %cst_72 {dimension_numbers = #tpu.dot_dimension_numbers<[1], [0], [0], [1], [0, 0, 1, 1], [], []>} : vector<8x128xbf16>, vector<128x32xbf16>, vector<8x32xf32> -> vector<8x32xf32>
    %c0_73 = arith.constant 0 : index
    %c0_74 = arith.constant 0 : index
    %177 = vector.load %arg14[%c0_73, %c0_74] : memref<1x32xf32, #tpu.memory_space<vmem>>, vector<1x32xf32>
    %178 = vector.broadcast %177 : vector<1x32xf32> to vector<8x32xf32>
    %179 = arith.addf %176, %178 : vector<8x32xf32>
    %180 = arith.addf %179, %135 : vector<8x32xf32>
    %181 = vector.shape_cast %180 : vector<8x32xf32> to vector<1x8x32xf32>
    %c0_75 = arith.constant 0 : index
    %c0_76 = arith.constant 0 : index
    %c0_77 = arith.constant 0 : index
    %182 = vector.load %arg15[%c0_75, %c0_76, %c0_77] : memref<1x8x32xf32, #tpu.memory_space<vmem>>, vector<1x8x32xf32>
    tpu.vector_store %arg15[%c0_75, %c0_76, %c0_77], %181 {strides = array<i32>} : memref<1x8x32xf32, #tpu.memory_space<vmem>>, vector<1x8x32xf32>,
    return
  }
  func.func @transform_0(%arg0: i32) -> (i32, i32, i32) {
    %c0_i32 = arith.constant 0 : i32
    %c0_i32_0 = arith.constant 0 : i32
    %c0_i32_1 = arith.constant 0 : i32
    return %arg0, %c0_i32, %c0_i32_0 : i32, i32, i32
  }
  func.func @transform_1(%arg0: i32) -> (i32, i32) {
    %c0_i32 = arith.constant 0 : i32
    %c0_i32_0 = arith.constant 0 : i32
    %c0_i32_1 = arith.constant 0 : i32
    return %c0_i32, %c0_i32_0 : i32, i32
  }
  func.func @transform_2(%arg0: i32) -> (i32, i32) {
    %c0_i32 = arith.constant 0 : i32
    %c0_i32_0 = arith.constant 0 : i32
    %c0_i32_1 = arith.constant 0 : i32
    return %c0_i32, %c0_i32_0 : i32, i32
  }
  func.func @transform_3(%arg0: i32) -> (i32, i32) {
    %c0_i32 = arith.constant 0 : i32
    %c0_i32_0 = arith.constant 0 : i32
    %c0_i32_1 = arith.constant 0 : i32
    return %c0_i32, %c0_i32_0 : i32, i32
  }
  func.func @transform_4(%arg0: i32) -> (i32, i32) {
    %c0_i32 = arith.constant 0 : i32
    %c0_i32_0 = arith.constant 0 : i32
    %c0_i32_1 = arith.constant 0 : i32
    return %c0_i32, %c0_i32_0 : i32, i32
  }
  func.func @transform_5(%arg0: i32) -> (i32, i32) {
    %c0_i32 = arith.constant 0 : i32
    %c0_i32_0 = arith.constant 0 : i32
    %c0_i32_1 = arith.constant 0 : i32
    return %c0_i32, %c0_i32_0 : i32, i32
  }
  func.func @transform_6(%arg0: i32) -> (i32, i32) {
    %c0_i32 = arith.constant 0 : i32
    %c0_i32_0 = arith.constant 0 : i32
    %c0_i32_1 = arith.constant 0 : i32
    return %c0_i32, %c0_i32_0 : i32, i32
  }
  func.func @transform_7(%arg0: i32) -> (i32, i32) {
    %c0_i32 = arith.constant 0 : i32
    %c0_i32_0 = arith.constant 0 : i32
    %c0_i32_1 = arith.constant 0 : i32
    return %c0_i32, %c0_i32_0 : i32, i32
  }
  func.func @transform_8(%arg0: i32) -> (i32, i32) {
    %c0_i32 = arith.constant 0 : i32
    %c0_i32_0 = arith.constant 0 : i32
    %c0_i32_1 = arith.constant 0 : i32
    return %c0_i32, %c0_i32_0 : i32, i32
  }
  func.func @transform_9(%arg0: i32) -> (i32, i32) {
    %c0_i32 = arith.constant 0 : i32
    %c0_i32_0 = arith.constant 0 : i32
    %c0_i32_1 = arith.constant 0 : i32
    return %c0_i32, %c0_i32_0 : i32, i32
  }
  func.func @transform_10(%arg0: i32) -> (i32, i32) {
    %c0_i32 = arith.constant 0 : i32
    %c0_i32_0 = arith.constant 0 : i32
    %c0_i32_1 = arith.constant 0 : i32
    return %c0_i32, %c0_i32_0 : i32, i32
  }
  func.func @transform_11(%arg0: i32) -> (i32, i32) {
    %c0_i32 = arith.constant 0 : i32
    %c0_i32_0 = arith.constant 0 : i32
    %c0_i32_1 = arith.constant 0 : i32
    return %c0_i32, %c0_i32_0 : i32, i32
  }
  func.func @transform_12(%arg0: i32) -> (i32, i32) {
    %c0_i32 = arith.constant 0 : i32
    %c0_i32_0 = arith.constant 0 : i32
    %c0_i32_1 = arith.constant 0 : i32
    return %c0_i32, %c0_i32_0 : i32, i32
  }
  func.func @transform_13(%arg0: i32) -> (i32, i32) {
    %c0_i32 = arith.constant 0 : i32
    %c0_i32_0 = arith.constant 0 : i32
    %c0_i32_1 = arith.constant 0 : i32
    return %c0_i32, %c0_i32_0 : i32, i32
  }
  func.func @transform_14(%arg0: i32) -> (i32, i32, i32) {
    %c0_i32 = arith.constant 0 : i32
    %c0_i32_0 = arith.constant 0 : i32
    %c0_i32_1 = arith.constant 0 : i32
    return %arg0, %c0_i32, %c0_i32_0 : i32, i32, i32
  }
}

</mosaic_0001>

<bundles_post_ra>
// kernel: tpu_custom_call.1
= control target key start
LH: loop header
LB: loop body
LE: loop exit
PB: predicated region body
PF: predicated region fallthrough
CT: control target
= control target key end

     0   :  { %s1636_s0 = inlined_call_operand.vmem [shape: f32[2,8,32], index: 0, kind: input, shape index: {}]   ;;  %s1637_s1 = inlined_call_operand.vmem [shape: f32[8,8], index: 1, kind: input, shape index: {}]   ;;  %s1638_s2 = inlined_call_operand.vmem [shape: f32[1,32], index: 2, kind: input, shape index: {}]   ;;  %s1639_s3 = inlined_call_operand.vmem [shape: f32[1,32], index: 3, kind: input, shape index: {}]   ;;  %s1640_s4 = inlined_call_operand.vmem [shape: bf16[32,96], index: 4, kind: input, shape index: {}]   ;;  %s1641_s5 = inlined_call_operand.vmem [shape: f32[1,96], index: 5, kind: input, shape index: {}]   ;;  %s1642_s6 = inlined_call_operand.vmem [shape: bf16[32,32], index: 6, kind: input, shape index: {}]   ;;  %s1643_s7 = inlined_call_operand.vmem [shape: f32[1,32], index: 7, kind: input, shape index: {}]   ;;  %s1644_s8 = inlined_call_operand.vmem [shape: f32[1,32], index: 8, kind: input, shape index: {}]   ;;  %s1645_s9 = inlined_call_operand.vmem [shape: f32[1,32], index: 9, kind: input, shape index: {}]   ;;  %s1646_s10 = inlined_call_operand.vmem [shape: bf16[32,128], index: 10, kind: input, shape index: {}]   ;;  %s1647_s11 = inlined_call_operand.vmem [shape: f32[1,128], index: 11, kind: input, shape index: {}]   ;;  %s1648_s12 = inlined_call_operand.vmem [shape: bf16[128,32], index: 12, kind: input, shape index: {}]   ;;  %s1649_s13 = inlined_call_operand.vmem [shape: f32[1,32], index: 13, kind: input, shape index: {}]   ;;  %s1650_s14 = inlined_call_operand.hbm [shape: f32[2,8,32], index: 14, kind: output, shape index: {}]  }
   0x1   :  { %1651 = sst [smem:[#allocation6_spill]] %s1636_s0 }
   0x2   :  { %1652 = sst [smem:[#allocation7_spill]] %s1637_s1 }
   0x3   :  { %1653 = sst [smem:[#allocation8_spill]] %s1638_s2 }
   0x4   :  { %1654 = sst [smem:[#allocation9_spill]] %s1639_s3 }
   0x5   :  { %1655 = sst [smem:[#allocation10_spill]] %s1640_s4 }
   0x6   :  { %19 = vsyncpa [#allocation4], 0 }
   0x7   :  { %21 = vsyncpa [#allocation4 + $0x1], 0  ;;  %s1420_s29 = smov 0   ;;  %s1422_s30 = smov 0  }
   0x8   :  { %s1424_s15 = smov 0   ;;  %s1426_s16 = smov 0  }
   0x9 LB: > { %s1441_s17 = sadd.s32 4294967295, %s1328_s16   ;;  %s1086_s18 = sadd.s32 4294967294, %s1328_s16   ;;  %s1328_s16 = sphi %s1426_s16, %s1666_s16   ;;  %s1324_s15 = sphi %s1424_s15, %s1665_s15   ;;  %s1320_s30 = sphi %s1422_s30, %s1664_s30   ;;  %s1316_s29 = sphi %s1420_s29, %s1663_s29  }
   0xa   : > { %s1445_s19 = sadd.s32 1, %s1328_s16   ;;  %s333_s20 = sadd.s32 1, %s1324_s15 }
   0xb   : > { %s330_s21 = ssub.s32 %s1328_s16, %s1445_s19  ;;  %p343_p0 = scmp.ne.s32.totalorder %s1324_s15, %s1320_s30 }
   0xc   : > { %p331_p1 = scmp.eq.s32.totalorder %s330_s21, 0  ;;  %p344_p2 = scmp.eq.s32.totalorder %s1441_s17, 1 }
   0xd   : > { %p349_p3 = scmp.ne.s32.totalorder %s1320_s30, %s1316_s29  ;;  %p350_p4 = scmp.eq.s32.totalorder %s1086_s18, 1 }
   0xe   : > { %s1456_s22 = scalar_select %p331_p1, %s1324_s15, %s333_s20  }
   0xf   : > { %p1458_p5 = por %p344_p2, %p343_p0  ;;  %p1462_p6 = por %p350_p4, %p349_p3 }
  0x10   : > { %p1089_p7 = scmp.ge.s32.totalorder %s1328_s16, 1  ;;  %p414_p8 = scmp.lt.s32.totalorder %s1328_s16, 3 }
  0x12   : > { %p415_p9 = pnand %p1089_p7, %p414_p8 }
  0x13   : > { %p459_p10 = scmp.lt.s32.totalorder (!%p415_p9), %s1441_s17, 1  ;;  %s1658_s0 = sld [smem:[#allocation6_spill]] (!%p415_p9) }
  0x14   : > { %418 = sbr.rel (%p415_p9) target bundleno = 2354 (0x932), region = 76  ;;  %s1659_s4 = sld [smem:[#allocation10_spill]] (!%p415_p9) }
  0x15   : > { %s1660_s2 = sld [smem:[#allocation8_spill]] (!%p415_p9)  ;;  %s1332_s27 = smov (!%p415_p9), 64  }
  0x16   : > { %s1661_s3 = sld [smem:[#allocation9_spill]] (!%p415_p9)  ;;  %s1333_s28 = smov (!%p415_p9), 96  }
  0x17   : > { %s1335_s20 = smov (!%p415_p9), 80   ;;  %s1662_s1 = sld [smem:[#allocation7_spill]] (!%p415_p9) }
  0x18   : > { %s1341_s21 = smov (!%p415_p9), 56  }
  0x19   : > { %s460_s25 = scalar_select %p459_p10, %s1441_s17, 1  ;;  %vm468_vm0 = vcmask 261120   ;;  %v1330_v2 = vmov 32.0   ;;  %v1234_v32 = vld [vmem:[%s1641_s5] ss:$0 sm:$0xff]  ;;  %vm588_vm5 = vcmask 1043456  }
  0x1a   : > { %1240 = vrcp.f32 %v1330_v2  ;;  %v1165_v14 = vld [vmem:[%s1659_s4 + $0x8] sm:$0xff]  ;;  %v1164_v15 = vld [vmem:[%s1659_s4] sm:$0xff]  ;;  %vm549_vm6 = vcmask 64512   ;;  %vm668_vm7 = vcmask 130112   ;;  %vm732_vm8 = vcmask 195712  }
  0x1b   : > { %s1091_s26 = sshll.u32 %s460_s25, 3  ;;  %536 = vmatpush.bf16.msra.mxu0 %v1165_v14  ;;  %v1232_v25 = vld [vmem:[%s1660_s2] ss:$0 sm:$0xff]  ;;  %s1342_s25 = smov 16   ;;  %vm796_vm9 = vcmask 261312  }
  0x1c   : > { %s462_s18 = scalar_lea.vmem %s1658_s0, %s1091_s26  ;;  %v1233_v28 = vld [vmem:[%s1661_s3] ss:$0 sm:$0xff]  ;;  %s1331_s26 = smov 88  }
  0x1d   : > { %v1473_v0 = vld [vmem:[%s462_s18] sm:$0xff]  ;;  %s1334_s18 = smov 72  }
  0x1e   : > { %v469_v1 = vsel %vm468_vm0, %v1473_v0, 0.0  ;;  %v465_v50 = vld [vmem:[%s1662_s1] sm:$0xff]  ;;  %s456_s1 = sand.u32 1, %s1320_s30  }
  0x1f   : > { %470 = vadd.xlane.f32.xlu0 %v469_v1  ;;  %537 = vmatpush.bf16.msra.mxu0 %v1164_v15  ;;  %s1090_s2 = sshll.u32 %s456_s1, 3 }
  0x20   : > { %v1241_v3 = vpop.eup %1240 }
  0x21   : > { %v473_v4 = vmul.f32 32.0, %v1241_v3  ;;  %vm477_vm1 = vweird.f32 %v1241_v3 }
  0x23   : > { %v474_v5 = vsub.f32 1.0, %v473_v4 }
  0x25   : > { %v475_v6 = vmul.f32 %v1241_v3, %v474_v5 }
  0x27   : > { %v476_v7 = vadd.f32 %v1241_v3, %v475_v6 }
  0x29   : > { %v1477_v8 = vsel %vm477_vm1, %v1241_v3, %v476_v7 }
  0x92   : > { %v471_v9 = vpop.xlane.xlu0 %470 }
  0x93   : > { %v479_v10 = vmul.f32 %v1477_v8, %v471_v9 }
  0x95   : > { %v480_v11 = vsub.f32 %v1473_v0, %v479_v10 }
  0x97   : > { %v481_v12 = vmul.f32 %v480_v11, %v480_v11 }
  0x99   : > { %v482_v13 = vsel %vm468_vm0, %v481_v12, 0.0 }
  0x9a   : > { %483 = vadd.xlane.f32.xlu0 %v482_v13 }
 0x10d   : > { %v484_v16 = vpop.xlane.xlu0 %483 }
 0x10e   : > { %v485_v17 = vmul.f32 %v484_v16, %v1477_v8 }
 0x110   : > { %v486_v18 = vadd.f32 1e-05, %v485_v17 }
 0x112   : > { %1242 = vrsqrt.f32 %v486_v18  ;;  %vm493_vm3 = vweird.f32 %v486_v18 }
 0x118   : > { %v1243_v19 = vpop.eup %1242 }
 0x119   : > { %v488_v20 = vmul.f32 %v1243_v19, %v486_v18  ;;  %vm494_vm2 = vweird.f32 %v1243_v19 }
 0x11a   : > { %vm495_vm4 = vmor %vm493_vm3, %vm494_vm2 }
 0x11b   : > { %v489_v21 = vmul.f32 %v1243_v19, %v488_v20 }
 0x11d   : > { %v490_v22 = vmul.f32 0.5, %v489_v21 }
 0x11f   : > { %v491_v23 = vsub.f32 1.5, %v490_v22 }
 0x121   : > { %v492_v24 = vmul.f32 %v1243_v19, %v491_v23 }
 0x123   : > { %v496_v26 = vsel %vm495_vm4, %v1243_v19, %v492_v24 }
 0x124   : > { %v497_v27 = vmul.f32 %v496_v26, %v480_v11 }
 0x126   : > { %v501_v29 = vmul.f32 %v1232_v25, %v497_v27 }
 0x128   : > { %v505_v30 = vadd.f32 %v1233_v28, %v501_v29 }
 0x12a   : > { %v510_v31 = vpack.c.bf16 %v505_v30, %v505_v30 }
 0x12c   : > { %1100 = vmatmul.msk.bf16.vlgmr.msra.gmra.mxu0 %vm468_vm0, %v510_v31 }
 0x1a9   : > { %v539_v33 = vpop.f32.mrf.mxu0 }
 0x1aa   : > { %v540_v34 = vadd.f32 %v1234_v32, %v539_v33 }
 0x1ac   : > { %v543_v35 = vpack.c.bf16 %v540_v34, %v540_v34 }
 0x1ae   : > { %v545_v36 = vunpack.c.l.b16 %v543_v35 }
 0x1b0   : > { %v1499_v37 = vpack.c.b16 %v545_v36, %v545_v36 }
 0x1b1   : > { %v541_v38 = vpop.f32.mrf.mxu0 }
 0x1b2   : > { %608 = vrot.lane.b32.xlu0 %v1499_v37, %s1331_s26  ;;  %583 = vrot.lane.b32.xlu2 %v1499_v37, %s1332_s27  ;;  %s1336_s26 = smov 120   ;;  %s1337_s27 = smov 104  }
 0x1b3   : > { %547 = vrot.lane.b32.xlu1 %v1499_v37, %s1333_s28  ;;  %s1338_s28 = smov 112  }
 0x1ba   : > { %736 = vrot.lane.b32.xlu0 %v1499_v37, %s1334_s18  ;;  %s1339_s18 = smov 40  }
 0x1c2   : > { %672 = vrot.lane.b32.xlu0 %v1499_v37, %s1335_s20  ;;  %s1340_s20 = smov 48  }
 0x20c   : > { %v584_v39 = vpop.permute.xlu2 %583 }
 0x20d   : > { %v590_v40 = vsel %vm588_vm5, %v584_v39, 0 }
 0x20e   : > { %599 = vmatpush.bf16.msra.mxu2 %v590_v40 }
 0x224   : > { %v609_v41 = vpop.permute.xlu0 %608 }
 0x225   : > { %v548_v42 = vpop.permute.xlu1 %547  ;;  %v614_v43 = vsel %vm549_vm6, %v609_v41, 0 }
 0x226   : > { %v554_v44 = vsel %vm549_vm6, %v548_v42, 0  ;;  %623 = vmatpush.bf16.xpose.msrb.mxu2 %v614_v43 }
 0x227   : > { %563 = vmatpush.bf16.xpose.msra.mxu1 %v554_v44 }
 0x22c   : > { %v737_v45 = vpop.permute.xlu0 %736 }
 0x22d   : > { %v742_v46 = vsel %vm549_vm6, %v737_v45, 0 }
 0x22e   : > { %1101 = vmatmul.msk.bf16.vlgmr.msra.gmra.mxu1 %vm549_vm6, %v543_v35  ;;  %751 = vmatpush.bf16.xpose.msra.mxu3 %v742_v46 }
 0x234   : > { %v673_v47 = vpop.permute.xlu0 %672 }
 0x235   : > { %v678_v48 = vsel %vm549_vm6, %v673_v47, 0 }
 0x236   : > { %687 = vmatpush.bf16.xpose.msrb.mxu0 %v678_v48 }
 0x2ab   : > { %v565_v49 = vpop.f32.mrf.mxu1 }
 0x2ac   : > { %v569_v51 = vmul.f32 0.35355338, %v565_v49 }
 0x2ae   : > { %v570_v52 = vadd.f32 %v569_v51, %v465_v50 }
 0x2b0   : > { %v571_v53 = vsel %vm549_vm6, %v570_v52, -inf }
 0x2b1   : > { %572 = vmax.xlane.f32.xlu1 %v571_v53 }
 0x2b3   : > { %v567_v54 = vpop.f32.mrf.mxu1 }
 0x324   : > { %v573_v55 = vpop.xlane.xlu1 %572 }
 0x325   : > { %v574_v56 = vsub.f32 %v570_v52, %v573_v55 }
 0x327   : > { %v575_v57 = vmul.f32 1.442695, %v574_v56 }
 0x329   : > { %1244 = vpow2.f32 %v575_v57 }
 0x32f   : > { %v1245_v58 = vpop.eup %1244 }
 0x330   : > { %v577_v59 = vsel %vm549_vm6, %v1245_v58, 0.0 }
 0x331   : > { %578 = vadd.xlane.f32.xlu2 %v577_v59 }
 0x349   : > { %606 = vrot.lane.b32.xlu2 %v1499_v37, %s1336_s26  ;;  %s1343_s26 = smov 8  }
 0x351   : > { %734 = vrot.lane.b32.xlu2 %v1499_v37, %s1337_s27  ;;  %s1344_s27 = smov 24  }
 0x359   : > { %670 = vrot.lane.b32.xlu2 %v1499_v37, %s1338_s28  ;;  %s1161_s28 = sshll.u32 %s1441_s17, 3  ;;  %s1012_s17 = scalar_lea.sflag [#allocation4], %s456_s1 }
 0x3a4   : > { %v579_v60 = vpop.xlane.xlu2 %578 }
 0x3a5   : > { %1246 = vrcp.f32 %v579_v60 }
 0x3ab   : > { %v1247_v61 = vpop.eup %1246 }
 0x3ac   : > { %v607_v62 = vpop.permute.xlu2 %606  ;;  %v581_v63 = vmul.f32 %v1247_v61, %v1245_v58  ;;  %v1167_v61 = vld [vmem:[%s1642_s6 + $0x8] sm:$0xff] }
 0x3ad   : > { %829 = vmatpush.bf16.msra.mxu0 %v1167_v61  ;;  %v1239_v61 = vld [vmem:[%s1649_s13] ss:$0 sm:$0xff] }
 0x3ae   : > { %v582_v1 = vpack.c.bf16 %v581_v63, %v581_v63 }
 0x3b0   : > { %1102 = vmatmul.msk.bf16.vlgmr.msra.gmra.mxu2 %vm549_vm6, %v582_v1  ;;  %v1166_v1 = vld [vmem:[%s1642_s6] sm:$0xff] }
 0x3b1   : > { %830 = vmatpush.bf16.msra.mxu0 %v1166_v1 }
 0x3b4   : > { %v735_v2 = vpop.permute.xlu2 %734 }
 0x3b5   : > { %1107 = vmatmul.msk.bf16.vlgmr.msra.gmra.mxu3 %vm549_vm6, %v735_v2 }
 0x3bc   : > { %v671_v3 = vpop.permute.xlu2 %670 }
 0x3bd   : > { %1105 = vmatmul.msk.bf16.vlgmr.msrb.gmra.mxu0 %vm549_vm6, %v671_v3 }
 0x3c0   : > { %1103 = vmatmul.msk.bf16.vlgmr.msrb.gmra.mxu2 %vm549_vm6, %v607_v62 }
 0x433   : > { %v601_v4 = vpop.f32.mrf.mxu2 }
 0x434   : > { %605 = vst.msk [vmem:[#allocation2] sm:$0xff] %vm549_vm6, %v601_v4 }
 0x438   : > { %v753_v5 = vpop.f32.mrf.mxu3 }
 0x439   : > { %v757_v6 = vmul.f32 0.35355338, %v753_v5  ;;  %v1235_v5 = vld [vmem:[%s1643_s7] ss:$0 sm:$0xff] }
 0x43a   : > { %v689_v7 = vpop.f32.mrf.mxu0 }
 0x43b   : > { %v693_v9 = vmul.f32 0.35355338, %v689_v7  ;;  %v603_v10 = vpop.f32.mrf.mxu2  ;;  %v758_v11 = vadd.f32 %v757_v6, %v465_v50 }
 0x43d   : > { %v759_v12 = vsel %vm549_vm6, %v758_v11, -inf  ;;  %v694_v13 = vadd.f32 %v693_v9, %v465_v50 }
 0x43e   : > { %760 = vmax.xlane.f32.xlu0 %v759_v12 }
 0x43f   : > { %v695_v14 = vsel %vm549_vm6, %v694_v13, -inf }
 0x440   : > { %v755_v15 = vpop.f32.mrf.mxu3  ;;  %696 = vmax.xlane.f32.xlu2 %v695_v14 }
 0x442   : > { %v691_v16 = vpop.f32.mrf.mxu0 }
 0x443   : > { %v625_v17 = vpop.f32.mrf.mxu2 }
 0x444   : > { %v629_v18 = vmul.f32 0.35355338, %v625_v17  ;;  %v1169_v17 = vld [vmem:[%s1646_s10 + $0x8] sm:$0xff] }
 0x446   : > { %v630_v19 = vadd.f32 %v629_v18, %v465_v50 }
 0x448   : > { %v631_v20 = vsel %vm549_vm6, %v630_v19, -inf }
 0x449   : > { %632 = vmax.xlane.f32.xlu1 %v631_v20 }
 0x44b   : > { %v627_v21 = vpop.f32.mrf.mxu2 }
 0x458   : > { %771 = vrot.lane.b32.xlu2 %v1499_v37, %s1339_s18 }
 0x4b1   : > { %v761_v32 = vpop.xlane.xlu0 %760 }
 0x4b2   : > { %v762_v33 = vsub.f32 %v758_v11, %v761_v32 }
 0x4b3   : > { %v697_v22 = vpop.xlane.xlu2 %696 }
 0x4b4   : > { %v698_v23 = vsub.f32 %v694_v13, %v697_v22  ;;  %v763_v34 = vmul.f32 1.442695, %v762_v33  ;;  %v1177_v33 = vld [vmem:[%s1648_s12 + $0x38] sm:$0xff] }
 0x4b5   : > { %996 = vmatpush.bf16.msrb.mxu3 %v1177_v33 }
 0x4b6   : > { %v699_v24 = vmul.f32 1.442695, %v698_v23 }
 0x4b8   : > { %1248 = vpow2.f32 %v699_v24 }
 0x4bb   : > { %v772_v45 = vpop.permute.xlu2 %771 }
 0x4bc   : > { %v633_v25 = vpop.xlane.xlu1 %632  ;;  %v777_v49 = vsel %vm588_vm5, %v772_v45, 0 }
 0x4bd   : > { %v634_v26 = vsub.f32 %v630_v19, %v633_v25 }
 0x4be   : > { %v1249_v27 = vpop.eup %1248 }
 0x4bf   : > { %v635_v28 = vmul.f32 1.442695, %v634_v26  ;;  %v701_v29 = vsel %vm549_vm6, %v1249_v27, 0.0 }
 0x4c0   : > { %702 = vadd.xlane.f32.xlu0 %v701_v29 }
 0x4c1   : > { %1250 = vpow2.f32 %v635_v28 }
 0x4c2   : > { %1252 = vpow2.f32 %v763_v34  ;;  %v1176_v34 = vld [vmem:[%s1648_s12 + $0x30] sm:$0xff] }
 0x4c3   : > { %997 = vmatpush.bf16.msrb.mxu3 %v1176_v34 }
 0x4c7   : > { %v1251_v30 = vpop.eup %1250 }
 0x4c8   : > { %v637_v31 = vsel %vm549_vm6, %v1251_v30, 0.0  ;;  %v1253_v35 = vpop.eup %1252 }
 0x4c9   : > { %638 = vadd.xlane.f32.xlu1 %v637_v31  ;;  %v765_v36 = vsel %vm549_vm6, %v1253_v35, 0.0 }
 0x4d4   : > { %707 = vrot.lane.b32.xlu0 %v1499_v37, %s1340_s20 }
 0x4e2   : > { %643 = vrot.lane.b32.xlu1 %v1499_v37, %s1341_s21 }
 0x50c   : > { %766 = vadd.xlane.f32.xlu1 %v765_v36  ;;  %v1174_v36 = vld [vmem:[%s1648_s12 + $0x20] sm:$0xff] }
 0x533   : > { %v703_v38 = vpop.xlane.xlu0 %702 }
 0x534   : > { %1254 = vrcp.f32 %v703_v38  ;;  %v1173_v38 = vld [vmem:[%s1648_s12 + $0x18] sm:$0xff] }
 0x53a   : > { %v1255_v39 = vpop.eup %1254 }
 0x53b   : > { %v705_v40 = vmul.f32 %v1255_v39, %v1249_v27  ;;  %v1236_v27 = vld [vmem:[%s1644_s8] ss:$0 sm:$0xff]  ;;  %v1172_v39 = vld [vmem:[%s1648_s12 + $0x10] sm:$0xff] }
 0x53c   : > { %v639_v42 = vpop.xlane.xlu1 %638 }
 0x53d   : > { %v706_v44 = vpack.c.bf16 %v705_v40, %v705_v40  ;;  %1256 = vrcp.f32 %v639_v42  ;;  %v1171_v40 = vld [vmem:[%s1648_s12 + $0x8] sm:$0xff] }
 0x543   : > { %v1257_v37 = vpop.eup %1256 }
 0x544   : > { %v641_v46 = vmul.f32 %v1257_v37, %v1251_v30 }
 0x546   : > { %v708_v41 = vpop.permute.xlu0 %707  ;;  %v642_v50 = vpack.c.bf16 %v641_v46, %v641_v46 }
 0x547   : > { %v713_v43 = vsel %vm588_vm5, %v708_v41, 0  ;;  %v1238_v41 = vld [vmem:[%s1647_s11] ss:$0 sm:$0xff] }
 0x548   : > { %722 = vmatpush.bf16.msrb.mxu1 %v713_v43  ;;  %v1170_v43 = vld [vmem:[%s1648_s12] sm:$0xff] }
 0x54b   : > { %1106 = vmatmul.msk.bf16.vlgmr.msrb.gmra.mxu1 %vm549_vm6, %v706_v44 }
 0x54c   : > { %899 = vmatpush.bf16.msra.mxu1 %v1169_v17 }
 0x554   : > { %v644_v47 = vpop.permute.xlu1 %643 }
 0x555   : > { %v649_v48 = vsel %vm588_vm5, %v644_v47, 0 }
 0x556   : > { %658 = vmatpush.bf16.msra.mxu2 %v649_v48 }
 0x559   : > { %1104 = vmatmul.msk.bf16.vlgmr.msra.gmra.mxu2 %vm549_vm6, %v642_v50 }
 0x55a   : > { %786 = vmatpush.bf16.msrb.mxu2 %v777_v49 }
 0x57f   : > { %v767_v51 = vpop.xlane.xlu1 %766 }
 0x580   : > { %1258 = vrcp.f32 %v767_v51 }
 0x586   : > { %v1259_v52 = vpop.eup %1258 }
 0x587   : > { %v769_v53 = vmul.f32 %v1259_v52, %v1253_v35  ;;  %v1175_v35 = vld [vmem:[%s1648_s12 + $0x28] sm:$0xff] }
 0x588   : > { %998 = vmatpush.bf16.msrb.mxu3 %v1175_v35 }
 0x589   : > { %v770_v54 = vpack.c.bf16 %v769_v53, %v769_v53 }
 0x58b   : > { %1108 = vmatmul.msk.bf16.vlgmr.msrb.gmra.mxu2 %vm549_vm6, %v770_v54 }
 0x58c   : > { %999 = vmatpush.bf16.msrb.mxu3 %v1174_v36 }
 0x590   : > { %1000 = vmatpush.bf16.msrb.mxu3 %v1173_v38 }
 0x594   : > { %1001 = vmatpush.bf16.msrb.mxu3 %v1172_v39 }
 0x598   : > { %1002 = vmatpush.bf16.msrb.mxu3 %v1171_v40 }
 0x59c   : > { %1003 = vmatpush.bf16.msrb.mxu3 %v1170_v43 }
 0x5c8   : > { %v724_v55 = vpop.f32.mrf.mxu1 }
 0x5c9   : > { %729 = vrot.lane.b32.xlu0 %v724_v55, %s1342_s25  ;;  %s1022_s25 = scalar_lea.hbm %s1650_s14, %s1161_s28 }
 0x5ca   : > { %s1026_s3 = sshll.u32 %s1022_s25, 4  ;;  %s1027_s3 = int_to_ptr.hbm [resolvable:$true] %s1026_s3 }
 0x5cb   : > { %s1280_s4 = sshra.s32 %s1027_s3, 4  ;;  %s1281_s4 = int_to_ptr.hbm [resolvable:$true] %s1280_s4 }
 0x5cc   : > { %s1282_s18 = scalar_lea.hbm %s1281_s4, 8  ;;  %p1287_p0 = scmp.lt.s32.totalorder %s1281_s4, %s1650_s14 }
 0x5cd   : > { %p1283_p11 = scmp.ne.s32.totalorder %s1281_s4, %s1282_s18 }
 0x5cf   : > { %p1284_p12 = pnand %p1283_p11, %p1458_p5 }
 0x5d0   : > { %v726_v56 = vpop.f32.mrf.mxu1 }
 0x5d1   : > { %p1285_p13 = pneg %p1284_p12 }
 0x5dc   : > { %v660_v57 = vpop.f32.mrf.mxu2 }
 0x5dd   : > { %665 = vrot.lane.b32.xlu2 %v660_v57, %s1343_s26  ;;  %s458_s26 = scalar_lea.vmem [#allocation3], %s1090_s2  ;;  %s1286_s2 = scalar_lea.hbm %s1650_s14, 16 }
 0x5de   : > { %p1288_p1 = scmp.lt.s32.totalorder %s1286_s2, %s1282_s18 }
 0x5e0   : > { %p1289_p2 = por %p1288_p1, %p1287_p0 }
 0x5e2   : > { %p1290_p3 = pnand %p1289_p2, %p1285_p13 }
 0x5e4   : > { %v662_v58 = vpop.f32.mrf.mxu2 }
 0x60e   : > { %v788_v59 = vpop.f32.mrf.mxu2 }
 0x60f   : > { %793 = vrot.lane.b32.xlu2 %v788_v59, %s1344_s27  ;;  %s1024_s27 = sshll.u32 %s458_s26, 4  ;;  %s1025_s27 = int_to_ptr.vmem [resolvable:$true] %s1024_s27 }
 0x616   : > { %v790_v60 = vpop.f32.mrf.mxu2 }
 0x637   : > { %v666_v62 = vpop.permute.xlu2 %665 }
 0x638   : > { %669 = vst.msk [vmem:[#allocation2] sm:$0xff] %vm668_vm7, %v666_v62 }
 0x63b   : > { %v730_v63 = vpop.permute.xlu0 %729 }
 0x63c   : > { %733 = vst.msk [vmem:[#allocation2] sm:$0xff] %vm732_vm8, %v730_v63 }
 0x669   : > { %v794_v2 = vpop.permute.xlu2 %793 }
 0x66a   : > { %797 = vst.msk [vmem:[#allocation2] sm:$0xff] %vm796_vm9, %v794_v2 }
 0x671   : > { %v798_v3 = vld [vmem:[#allocation2] sm:$0xff] }
 0x672   : > { %v803_v4 = vpack.c.bf16 %v798_v3, %v798_v3 }
 0x674   : > { %1117 = vmatmul.msk.bf16.vlgmr.msra.gmra.mxu0 %vm468_vm0, %v803_v4 }
 0x6f1   : > { %v832_v6 = vpop.f32.mrf.mxu0 }
 0x6f2   : > { %v833_v7 = vadd.f32 %v1235_v5, %v832_v6 }
 0x6f4   : > { %v1551_v9 = vadd.f32 %v833_v7, %v1473_v0  ;;  %v1168_v0 = vld [vmem:[%s1646_s10] sm:$0xff] }
 0x6f5   : > { %900 = vmatpush.bf16.msra.mxu1 %v1168_v0 }
 0x6f6   : > { %v839_v10 = vsel %vm468_vm0, %v1551_v9, 0.0 }
 0x6f7   : > { %840 = vadd.xlane.f32.xlu0 %v839_v10 }
 0x6f9   : > { %v834_v11 = vpop.f32.mrf.mxu0 }
 0x76a   : > { %v841_v12 = vpop.xlane.xlu0 %840 }
 0x76b   : > { %v842_v13 = vmul.f32 %v841_v12, %v1477_v8 }
 0x76d   : > { %v843_v14 = vsub.f32 %v1551_v9, %v842_v13 }
 0x76f   : > { %v844_v15 = vmul.f32 %v843_v14, %v843_v14 }
 0x771   : > { %v845_v16 = vsel %vm468_vm0, %v844_v15, 0.0 }
 0x772   : > { %846 = vadd.xlane.f32.xlu1 %v845_v16 }
 0x7e5   : > { %v847_v18 = vpop.xlane.xlu1 %846 }
 0x7e6   : > { %v848_v19 = vmul.f32 %v847_v18, %v1477_v8  ;;  %v1237_v8 = vld [vmem:[%s1645_s9] ss:$0 sm:$0xff] }
 0x7e8   : > { %v849_v20 = vadd.f32 1e-05, %v848_v19 }
 0x7ea   : > { %1260 = vrsqrt.f32 %v849_v20  ;;  %vm856_vm11 = vweird.f32 %v849_v20 }
 0x7f0   : > { %v1261_v21 = vpop.eup %1260 }
 0x7f1   : > { %v851_v22 = vmul.f32 %v1261_v21, %v849_v20  ;;  %vm857_vm10 = vweird.f32 %v1261_v21 }
 0x7f2   : > { %vm858_vm12 = vmor %vm856_vm11, %vm857_vm10 }
 0x7f3   : > { %v852_v23 = vmul.f32 %v1261_v21, %v851_v22 }
 0x7f5   : > { %v853_v24 = vmul.f32 0.5, %v852_v23 }
 0x7f7   : > { %v854_v25 = vsub.f32 1.5, %v853_v24 }
 0x7f9   : > { %v855_v26 = vmul.f32 %v1261_v21, %v854_v25 }
 0x7fb   : > { %v859_v28 = vsel %vm858_vm12, %v1261_v21, %v855_v26 }
 0x7fc   : > { %v860_v29 = vmul.f32 %v859_v28, %v843_v14 }
 0x7fe   : > { %v864_v30 = vmul.f32 %v1236_v27, %v860_v29 }
 0x800   : > { %v868_v31 = vadd.f32 %v1237_v8, %v864_v30 }
 0x802   : > { %v873_v32 = vpack.c.bf16 %v868_v31, %v868_v31 }
 0x804   : > { %1126 = vmatmul.msk.bf16.vlgmr.msra.gmra.mxu1 %vm468_vm0, %v873_v32 }
 0x881   : > { %v902_v42 = vpop.f32.mrf.mxu1 }
 0x882   : > { %v903_v44 = vadd.f32 %v1238_v41, %v902_v42 }
 0x884   : > { %v1127_v37 = vmul.f32 -1.702, %v903_v44 }
 0x886   : > { %v908_v45 = vmul.f32 1.442695, %v1127_v37 }
 0x888   : > { %1262 = vpow2.f32 %v908_v45 }
 0x889   : > { %v904_v46 = vpop.f32.mrf.mxu1 }
 0x88e   : > { %v1263_v47 = vpop.eup %1262 }
 0x88f   : > { %v910_v48 = vadd.f32 1.0, %v1263_v47 }
 0x891   : > { %1264 = vrcp.f32 %v910_v48  ;;  %v922_v52 = vand.u32 2147483648, %v910_v48  ;;  %v920_v54 = vand.u32 2147483647, %v910_v48  ;;  %vm916_vm14 = vweird.f32 %v910_v48 }
 0x893   : > { %v923_v56 = vor.u32 1.1754944e-38, %v922_v52  ;;  %vm921_vm1 = vcmp.eq.f32.partialorder %v920_v54, 8.507059e+37 }
 0x897   : > { %v1265_v49 = vpop.eup %1264 }
 0x898   : > { %v912_v50 = vmul.f32 %v1265_v49, %v910_v48  ;;  %vm917_vm13 = vweird.f32 %v1265_v49 }
 0x899   : > { %vm918_vm15 = vmor %vm916_vm14, %vm917_vm13 }
 0x89a   : > { %v913_v51 = vsub.f32 1.0, %v912_v50 }
 0x89c   : > { %v914_v53 = vmul.f32 %v1265_v49, %v913_v51 }
 0x89e   : > { %v915_v55 = vadd.f32 %v1265_v49, %v914_v53 }
 0x8a0   : > { %v919_v57 = vsel %vm918_vm15, %v1265_v49, %v915_v55 }
 0x8a1   : > { %v924_v58 = vsel %vm921_vm1, %v923_v56, %v919_v57 }
 0x8a2   : > { %v926_v59 = vmul.f32 %v924_v58, %v903_v44 }
 0x8a4   : > { %v943_v60 = vpack.c.bf16 %v926_v59, %v926_v59 }
 0x8a6   : > { %1004 = vmatmul.bf16.vlgmr.msrb.gmra.mxu3 %v943_v60 }
 0x929   : > { %v1005_v62 = vpop.f32.mrf.mxu3 }
 0x92a   : > { %v1006_v63 = vadd.f32 %v1239_v61, %v1005_v62 }
 0x92c   : > { %v1009_v1 = vadd.f32 %v1006_v63, %v1551_v9 }
 0x92e   : > { %1010 = vst.msk [vmem:[%s458_s26] sm:$0xff] %vm468_vm0, %v1009_v1 }
 0x92f   : > { %1293 = shalt.err (!%p1290_p3)
}
 0x930   : > { %1178 = dma.vmem_to_hbm [thread:$0]  (%p1458_p5), %s1025_s27, 128, %s1027_s3, %s1012_s17  }
 0x931   : > { %v1007_v2 = vpop.f32.mrf.mxu3 }
 0x932 PF: > { %p1184_p4 = scmp.ge.s32.totalorder %s1328_s16, 2  ;;  %s1038_s1 = sand.u32 1, %s1316_s29  }
 0x933   : > { %s1039_s25 = scalar_lea.sflag [#allocation4], %s1038_s1 }
 0x934   : > { %p1181_p7 = pnand %p1184_p4, %p1462_p6 }
 0x936   : > { %p1182_p8 = pneg %p1181_p7 }
 0x938   : > { %1311 = dma.done.wait (%p1182_p8), %s1039_s25, 128  }
 0x939   : > { %1313 = vsyncadd (%p1182_p8), %s1039_s25, 4294967168  ;;  %p24_p9 = scmp.ge.s32.totalorder %s1445_s19, 4   ;;  %s1663_s29 = smov %s1320_s30 }
 0x93a   : > { %s1664_s30 = smov %s1324_s15  ;;  %s1665_s15 = smov %s1456_s22 }
 0x93b   : > { %s1666_s16 = smov %s1445_s19  ;;  %26 = sbr.rel (!%p24_p9) target bundleno = 9 (0x9), region = 111 }
 0x940   :  { %1045 = vsyncpa [#allocation4], 1 }
 0x941   :  { %1047 = vsyncpa [#allocation4 + $0x1], 1 }

</bundles_post_ra>
